<compile_context>
chip_gen: v7x
topology: tpu7x:2x2x1
jax: 0.10.0
libtpu: 0.0.40
codegen_flags: <defaults>
</compile_context>

<pallas_src>
import math

import jax
import jax.numpy as jnp
from jax import lax
from jax.experimental import pallas as pl
from jax.experimental.pallas import tpu as pltpu


def _fused_kernel(x_ref, w_ref, b_ref, o_ref):
    # Single lane-dense MXU matmul: (c_out, K) @ (K, B*lc) -> f32, + bias.
    y = jnp.dot(w_ref[...], x_ref[...], preferred_element_type=jnp.float32)
    o_ref[...] = (y + b_ref[...]).astype(o_ref.dtype)


def grad_encoder_forward(params, x):
    """Fused Grad_Encoder forward. x: (N, 32, L) f32 -> (N, 4, L_out) f32."""
    n, c_in, l_in = x.shape
    wa, ba = params["conva"]
    wb, bb = params["convb"]
    wc, bc = params["convc"]
    c_a, c_b, c_c = wa.shape[0], wb.shape[0], wc.shape[0]

    la = l_in - 1                # conva: k=2, stride=1
    lb = (la - 2) // 2 + 1       # convb: k=2, stride=2
    lc = (lb - 2) // 2 + 1       # convc: k=2, stride=2
    assert 4 * lc <= l_in - 1    # guaranteed by the formulas above

    # ---- Fold the 3 convs into one effective Conv1d(32->4, k=5, stride=4) ----
    wa0, wa1 = wa[:, :, 0], wa[:, :, 1]          # (16, 32)
    wb0, wb1 = wb[:, :, 0], wb[:, :, 1]          # (8, 16)
    wc0, wc1 = wc[:, :, 0], wc[:, :, 1]          # (4, 8)

    cb00 = wc0 @ wb0
    cb01 = wc0 @ wb1
    cb10 = wc1 @ wb0
    cb11 = wc1 @ wb1                             # each (4, 16)

    k0 = cb00 @ wa0                              # tap x[4u+0]
    k1 = cb00 @ wa1 + cb01 @ wa0                 # tap x[4u+1]
    k2 = cb01 @ wa1 + cb10 @ wa0                 # tap x[4u+2]
    k3 = cb10 @ wa1 + cb11 @ wa0                 # tap x[4u+3]
    k4 = cb11 @ wa1                              # tap x[4u+4]
    # W_eff[o, q*c_in + c] = K_q[o, c]
    w_eff = jnp.stack([k0, k1, k2, k3, k4], axis=1).reshape(c_c, 5 * c_in)
    wc_s = wc0 + wc1
    wb_s = wb0 + wb1
    b_eff = wc_s @ (wb_s @ ba) + wc_s @ bb + bc  # (4,)

    # ---- Batch blocking / padding --------------------------------------------
    bsz = min(n, 128)                            # B*lc is a multiple of 128 when tiled
    n_blocks = -(-n // bsz)
    n_pad = n_blocks * bsz
    x_p = x if n_pad == n else jnp.pad(x, ((0, n_pad - n), (0, 0), (0, 0)))

    # ---- Thin im2col (window 5, stride 4), contraction-major, lane-dense ------
    # X_col[q*c_in + c, n, s] = x[n, c, 4*s + q]
    cols = jnp.stack([x_p[:, :, q: q + 4 * lc: 4] for q in range(5)], axis=1)
    x_col = cols.reshape(n_pad, 5 * c_in, lc)
    x_col = jnp.transpose(x_col, (1, 0, 2)).reshape(5 * c_in, n_pad * lc)

    # bf16 matmul operands, f32 accumulation inside the kernel.
    x_col = x_col.astype(jnp.bfloat16)
    w_eff = w_eff.astype(jnp.bfloat16)
    b_col = b_eff.reshape(c_c, 1).astype(jnp.float32)

    out_flat = pl.pallas_call(
        _fused_kernel,
        out_shape=jax.ShapeDtypeStruct((c_c, n_pad * lc), jnp.float32),
        grid=(n_blocks,),
        in_specs=[
            pl.BlockSpec((5 * c_in, bsz * lc), lambda i: (0, i)),
            pl.BlockSpec((c_c, 5 * c_in), lambda i: (0, 0)),
            pl.BlockSpec((c_c, 1), lambda i: (0, 0)),
        ],
        out_specs=pl.BlockSpec((c_c, bsz * lc), lambda i: (0, i)),
        compiler_params=pltpu.CompilerParams(
            dimension_semantics=("parallel",)),
    )(x_col, w_eff, b_col)

    out = out_flat.reshape(c_c, n_pad, lc).transpose(1, 0, 2)
    return out[:n].astype(x.dtype)


def init_params(key):
    """Deterministic init matching PyTorch Conv1d default (uniform +/- 1/sqrt(fan_in))."""
    def conv_init(k, c_out, c_in, ksize=2):
        bound = 1.0 / math.sqrt(c_in * ksize)
        kw, kb = jax.random.split(k)
        w = jax.random.uniform(kw, (c_out, c_in, ksize), jnp.float32, -bound, bound)
        b = jax.random.uniform(kb, (c_out,), jnp.float32, -bound, bound)
        return w, b

    k1, k2, k3 = jax.random.split(key, 3)
    return {
        "conva": conv_init(k1, 16, 32),   # Conv1d(32, 16, 2, stride=1)
        "convb": conv_init(k2, 8, 16),    # Conv1d(16,  8, 2, stride=2)
        "convc": conv_init(k3, 4, 8),     # Conv1d( 8,  4, 2, stride=2)
    }


def _ref_conv1d(x, w, b, stride):
    y = lax.conv_general_dilated(
        x, w, window_strides=(stride,), padding="VALID",
        dimension_numbers=("NCH", "OIH", "NCH"),
        precision=lax.Precision.HIGHEST)
    return y + b[None, :, None]


if __name__ == "__main__":
    key = jax.random.PRNGKey(0)
    kx, kp = jax.random.split(key)

    N, C, L = 2, 32, 64                 # input consistent with Conv1d(32, ...)
    x = jax.random.normal(kx, (N, C, L), jnp.float32)
    params = init_params(kp)

    out = jax.block_until_ready(jax.jit(grad_encoder_forward)(params, x))

    # Reference (XLA conv chain) check.
    ref = x
    for name, stride in (("conva", 1), ("convb", 2), ("convc", 2)):
        w, b = params[name]
        ref = _ref_conv1d(ref, w, b, stride)

    assert out.shape == (N, 4, 15), out.shape
    err = float(jnp.max(jnp.abs(out - ref)))
    assert jnp.allclose(out, ref, rtol=2e-2, atol=2e-2), f"max abs err {err}"
    print("KERNEL_OK")
</pallas_src>

<mosaic_0001>
module attributes {stable_mosaic.version = 11 : i64} {
  func.func @_fused_kernel(%arg0: i32, %arg1: memref<160x30xbf16, #tpu.memory_space<vmem>>, %arg2: memref<4x160xbf16, #tpu.memory_space<vmem>>, %arg3: memref<4x1xf32, #tpu.memory_space<vmem>>, %arg4: memref<4x30xf32, #tpu.memory_space<vmem>>) attributes {dimension_semantics = [#tpu.dimension_semantics<parallel>], iteration_bounds = array<i64: 1>, scalar_prefetch = 0 : i64, scratch_operands = 0 : i64, tpu.core_type = #tpu.core_type<tc>, window_params = [{transform_indices = @transform_0, window_bounds = array<i64: 160, 30>}, {pipeline_mode = #tpu.pipeline_mode<synchronous>, transform_indices = @transform_1, window_bounds = array<i64: 4, 160>}, {pipeline_mode = #tpu.pipeline_mode<synchronous>, transform_indices = @transform_2, window_bounds = array<i64: 4, 1>}, {transform_indices = @transform_3, window_bounds = array<i64: 4, 30>}]} {
    %c0 = arith.constant 0 : index
    %c0_0 = arith.constant 0 : index
    %0 = vector.load %arg2[%c0, %c0_0] : memref<4x160xbf16, #tpu.memory_space<vmem>>, vector<4x160xbf16>
    %c0_1 = arith.constant 0 : index
    %c0_2 = arith.constant 0 : index
    %1 = vector.load %arg1[%c0_1, %c0_2] : memref<160x30xbf16, #tpu.memory_space<vmem>>, vector<160x30xbf16>
    %cst = arith.constant dense<0.000000e+00> : vector<4x30xf32>
    %2 = tpu.matmul %0, %1, %cst {dimension_numbers = #tpu.dot_dimension_numbers<[1], [0], [0], [1], [0, 0, 1, 1], [], []>} : vector<4x160xbf16>, vector<160x30xbf16>, vector<4x30xf32> -> vector<4x30xf32>
    %c0_3 = arith.constant 0 : index
    %c0_4 = arith.constant 0 : index
    %3 = vector.load %arg3[%c0_3, %c0_4] : memref<4x1xf32, #tpu.memory_space<vmem>>, vector<4x1xf32>
    %4 = vector.broadcast %3 : vector<4x1xf32> to vector<4x30xf32>
    %5 = arith.addf %2, %4 : vector<4x30xf32>
    %c0_5 = arith.constant 0 : index
    %c0_6 = arith.constant 0 : index
    %6 = vector.load %arg4[%c0_5, %c0_6] : memref<4x30xf32, #tpu.memory_space<vmem>>, vector<4x30xf32>
    tpu.vector_store %arg4[%c0_5, %c0_6], %5 {strides = array<i32>} : memref<4x30xf32, #tpu.memory_space<vmem>>, vector<4x30xf32>,
    return
  }
  func.func @transform_0(%arg0: i32) -> (i32, i32) {
    %c0_i32 = arith.constant 0 : i32
    %c0_i32_0 = arith.constant 0 : i32
    return %c0_i32, %arg0 : i32, i32
  }
  func.func @transform_1(%arg0: i32) -> (i32, i32) {
    %c0_i32 = arith.constant 0 : i32
    %c0_i32_0 = arith.constant 0 : i32
    %c0_i32_1 = arith.constant 0 : i32
    return %c0_i32, %c0_i32_0 : i32, i32
  }
  func.func @transform_2(%arg0: i32) -> (i32, i32) {
    %c0_i32 = arith.constant 0 : i32
    %c0_i32_0 = arith.constant 0 : i32
    %c0_i32_1 = arith.constant 0 : i32
    return %c0_i32, %c0_i32_0 : i32, i32
  }
  func.func @transform_3(%arg0: i32) -> (i32, i32) {
    %c0_i32 = arith.constant 0 : i32
    %c0_i32_0 = arith.constant 0 : i32
    return %c0_i32, %arg0 : i32, i32
  }
}

</mosaic_0001>

<bundles_post_ra>
// kernel: grad_encoder_forward.1
= control target key start
LH: loop header
LB: loop body
LE: loop exit
PB: predicated region body
PF: predicated region fallthrough
CT: control target
= control target key end

     0   :  { %v186_v0 = vmov 0   ;;  %vm112_vm0 = vcmask 261120   ;;  %vm156_vm1 = vcmask 240640   ;;  %s246_s0 = inlined_call_operand.vmem [shape: bf16[160,30], index: 0, kind: input, shape index: {}]   ;;  %s247_s1 = inlined_call_operand.vmem [shape: bf16[4,160], index: 1, kind: input, shape index: {}]   ;;  %s248_s2 = inlined_call_operand.vmem [shape: f32[4,1], index: 2, kind: input, shape index: {}]   ;;  %s249_s3 = inlined_call_operand.vmem [shape: f32[4,30], index: 3, kind: output, shape index: {}]  }
   0x1   :  { %116 = vmatprep.subr.bf16.mxu0 %v186_v0  ;;  %v176_v1 = vld [vmem:[%s246_s0] sm:$0xff]   ;;  %175 = vset.pattern.permute.xlu0 %v186_v0  ;;  %v177_v2 = vld [vmem:[%s246_s0 + $0x8] sm:$0xff]   ;;  %v178_v3 = vld [vmem:[%s246_s0 + $0x10] sm:$0xff]  }
   0x2   :  { %117 = vmatpush1.bf16.msra.mxu0 %v176_v1  ;;  %v179_v4 = vld [vmem:[%s246_s0 + $0x18] sm:$0xff]   ;;  %v162_v5 = vld.sshfl [vmem:[%s247_s1] sm:$0x33 pattern:$0x76325410]  ;;  %v181_v9 = vld [vmem:[%s246_s0 + $0x28] sm:$0xff]  }
   0x3   :  { %118 = vmatprep.subr.bf16.mxu0 %v186_v0  ;;  %v36_v6 = vld [vmem:[%s248_s2] sm:$0xf]  ;;  %v50_v7 = vcombine.high %v162_v5, %v162_v5  ;;  %v182_v10 = vld [vmem:[%s246_s0 + $0x30] sm:$0xff]   ;;  %v183_v11 = vld [vmem:[%s246_s0 + $0x38] sm:$0xff]  }
   0x4   :  { %39 = vperm.xlu0 %175, %v36_v6   ;;  %v180_v8 = vld [vmem:[%s246_s0 + $0x20] sm:$0xff]   ;;  %v185_v13 = vld [vmem:[%s246_s0 + $0x48] sm:$0xff]  }
   0x5   :  { %173 = vmatprep.mubr.msk.bf16.mxu0 %vm112_vm0, %v50_v7  ;;  %v184_v12 = vld [vmem:[%s246_s0 + $0x40] sm:$0xff]  }
   0x6   :  { %119 = vmatpush1.bf16.msra.mxu0 %v177_v2 }
   0x7   :  { %120 = vmatprep.subr.bf16.mxu0 %v186_v0 }
   0xa   :  { %121 = vmatpush1.bf16.msra.mxu0 %v178_v3 }
   0xb   :  { %122 = vmatprep.subr.bf16.mxu0 %v186_v0 }
   0xe   :  { %123 = vmatpush1.bf16.msra.mxu0 %v179_v4 }
   0xf   :  { %124 = vmatprep.subr.bf16.mxu0 %v186_v0 }
  0x12   :  { %125 = vmatpush1.bf16.msra.mxu0 %v180_v8 }
  0x13   :  { %126 = vmatprep.subr.bf16.mxu0 %v186_v0 }
  0x16   :  { %127 = vmatpush1.bf16.msra.mxu0 %v181_v9 }
  0x17   :  { %128 = vmatprep.subr.bf16.mxu0 %v186_v0 }
  0x1a   :  { %129 = vmatpush1.bf16.msra.mxu0 %v182_v10 }
  0x1b   :  { %130 = vmatprep.subr.bf16.mxu0 %v186_v0 }
  0x1e   :  { %131 = vmatpush1.bf16.msra.mxu0 %v183_v11 }
  0x1f   :  { %132 = vmatprep.subr.bf16.mxu0 %v186_v0 }
  0x22   :  { %133 = vmatpush1.bf16.msra.mxu0 %v184_v12 }
  0x23   :  { %134 = vmatprep.subr.bf16.mxu0 %v186_v0 }
  0x26   :  { %135 = vmatpush1.bf16.msra.mxu0 %v185_v13 }
  0x29   :  { %149 = vmatmul.mubr.bf16.vlgmr.msra.gmra.mrb[0].mxu0 %v162_v5 }
  0x83   :  { %v40_v14 = vpop.permute.xlu0 %39 }
  0xfc   :  { %v150_v15 = vpop.f32.mrb[0].mxu0 }
  0xfd   :  { %v151_v16 = vadd.f32 %v150_v15, %v40_v14  ;;  %v152_v17 = vpop.f32.mrb[1].mxu0 }
  0xfe   :  { %v153_v18 = vpop.f32.mrb[2].mxu0 }
  0xff   :  { %157 = vst.msk [vmem:[%s249_s3] sm:$0xf] %vm156_vm1, %v151_v16  ;;  %v154_v19 = vpop.f32.mrb[3].mxu0 }

</bundles_post_ra>
